<compile_context>
chip_gen: v7x
topology: tpu7x:2x2x1
jax: 0.10.0
libtpu: 0.0.40
codegen_flags: <defaults>
</compile_context>

<pallas_src>
import functools

import jax
import jax.numpy as jnp
from jax.experimental import pallas as pl
from jax.experimental.pallas import tpu as pltpu

OUT_PAD = 16       # real out_dim (12) padded to 16; sliced off in the wrapper
DEFAULT_TB = 2048  # max batch tile; footprint is tiny, fits every generation's VMEM
SUBCHUNK = 256     # rows per in-kernel sub-chunk (MXU M granularity)


def _round_up(n, m):
    return ((n + m - 1) // m) * m


def _choose_tb(B):
    """Pick the batch tile: >=2 grid steps when possible (v7x megacore), 256-row
    multiples, capped at DEFAULT_TB; tiny batches only pad to 16 rows."""
    target = _round_up(_round_up(B, 256) // 2, 256)
    tb = max(256, min(DEFAULT_TB, target))
    tb = min(tb, _round_up(B, 16))
    return max(16, tb)


def _softsign(x):
    # nn.Softsign: x / (1 + |x|); approx reciprocal runs on the EUP slot.
    return x * pl.reciprocal(1.0 + jnp.abs(x), approx=True)


def mlp_kernel(x_ref, w1_ref, b1_ref, w2_ref, b2_ref, w3_ref, b3_ref, o_ref):
    # x_ref: (tb, 96) f32 tile; weights bf16 (VMEM-resident), biases f32.
    w1 = w1_ref[...]
    b1 = b1_ref[...]
    w2 = w2_ref[...]
    b2 = b2_ref[...]
    w3 = w3_ref[...]
    b3 = b3_ref[...]

    def run_chunk(x_f32):
        x = x_f32.astype(jnp.bfloat16)  # in-kernel cast (cheap VPU op)
        h1 = _softsign(jnp.dot(x, w1, preferred_element_type=jnp.float32) + b1)
        h2 = _softsign(jnp.dot(h1.astype(jnp.bfloat16), w2,
                               preferred_element_type=jnp.float32) + b2)
        return jnp.dot(h2.astype(jnp.bfloat16), w3,
                       preferred_element_type=jnp.float32) + b3

    tb = x_ref.shape[0]
    if tb > SUBCHUNK and tb % SUBCHUNK == 0:
        # Sub-chunk the tile so MXU work of chunk j overlaps VPU/EUP work of chunk j-1.
        for j in range(tb // SUBCHUNK):
            lo = j * SUBCHUNK
            o_ref[pl.ds(lo, SUBCHUNK), :] = run_chunk(
                x_ref[pl.ds(lo, SUBCHUNK), :]).astype(o_ref.dtype)
    else:
        o_ref[...] = run_chunk(x_ref[...]).astype(o_ref.dtype)
    # TODO(synk): on v6e/v7x the bias-add + softsign could run in bf16 (v5e has no
    # bf16 VALU/EUP); kept in f32 here for a single cross-generation kernel.


def pack_params(params):
    """One-time layout prep: weights -> bf16, last layer padded 12 -> 16 wide."""
    w1, b1, w2, b2, w3, b3 = (params["w1"], params["b1"], params["w2"],
                              params["b2"], params["w3"], params["b3"])
    in_dim, hidden = w1.shape
    out_dim = w3.shape[1]

    w3p = jnp.zeros((hidden, OUT_PAD), jnp.bfloat16).at[:, :out_dim].set(
        w3.astype(jnp.bfloat16))
    b3p = jnp.zeros((1, OUT_PAD), jnp.float32).at[:, :out_dim].set(
        b3.astype(jnp.float32))

    return dict(
        w1=w1.astype(jnp.bfloat16), b1=b1.astype(jnp.float32),
        w2=w2.astype(jnp.bfloat16), b2=b2.astype(jnp.float32),
        w3=w3p, b3=b3p,
        in_dim=in_dim, hidden=hidden, out_dim=out_dim,
    )


@functools.partial(jax.jit, static_argnames=("tb",))
def _forward_padded(x_p, w1, b1, w2, b2, w3, b3, *, tb):
    B_pad, in_dim = x_p.shape
    hidden = w2.shape[0]
    nb = B_pad // tb

    grid_spec = pltpu.PrefetchScalarGridSpec(
        num_scalar_prefetch=0,
        grid=(nb,),
        in_specs=[
            # Streamed raw f32 x tile; 96 == full last dim so the block is legal.
            pl.BlockSpec((tb, in_dim), lambda i: (i, 0)),
            # Weights / biases: same block every step -> VMEM-resident.
            pl.BlockSpec((in_dim, hidden), lambda i: (0, 0)),
            pl.BlockSpec((1, hidden), lambda i: (0, 0)),
            pl.BlockSpec((hidden, hidden), lambda i: (0, 0)),
            pl.BlockSpec((1, hidden), lambda i: (0, 0)),
            pl.BlockSpec((hidden, OUT_PAD), lambda i: (0, 0)),
            pl.BlockSpec((1, OUT_PAD), lambda i: (0, 0)),
        ],
        # Narrow (16-wide) output: ~8x less write-back HBM traffic than 128-wide f32.
        out_specs=pl.BlockSpec((tb, OUT_PAD), lambda i: (i, 0)),
    )

    return pl.pallas_call(
        mlp_kernel,
        out_shape=jax.ShapeDtypeStruct((B_pad, OUT_PAD), jnp.float32),
        grid_spec=grid_spec,
        compiler_params=pltpu.CompilerParams(
            dimension_semantics=("parallel",)),   # megacore sharding on v7x
    )(x_p, w1, b1, w2, b2, w3, b3)


def big_mlp_forward(x, packed, *, tb=None):
    """x: [B, in_dim] float32. packed: output of pack_params. Returns [B, out_dim] f32."""
    B, in_dim = x.shape
    assert in_dim == packed["in_dim"]
    out_dim = packed["out_dim"]

    if tb is None:
        tb = _choose_tb(B)
    B_pad = _round_up(B, tb)
    if B_pad != B:
        # Only the batch dim is padded (no feature pad, no dtype cast pass over x).
        x = jnp.pad(x, ((0, B_pad - B), (0, 0)))

    out_p = _forward_padded(x, packed["w1"], packed["b1"], packed["w2"],
                            packed["b2"], packed["w3"], packed["b3"], tb=tb)
    # 16-wide output => this slice reads ~64 B/row, essentially free.
    return out_p[:B, :out_dim]


def init_params(key, in_dim=96, hidden=256, out_dim=12):
    """Deterministic init mimicking PyTorch nn.Linear default (U[-1/sqrt(fan_in), +])."""
    def linear(k, fan_in, fan_out):
        kw, kb = jax.random.split(k)
        bound = 1.0 / jnp.sqrt(fan_in)
        # stored as [in, out] (transposed relative to PyTorch's [out, in])
        w = jax.random.uniform(kw, (fan_in, fan_out), jnp.float32, -bound, bound)
        b = jax.random.uniform(kb, (1, fan_out), jnp.float32, -bound, bound)
        return w, b

    k1, k2, k3 = jax.random.split(key, 3)
    w1, b1 = linear(k1, in_dim, hidden)
    w2, b2 = linear(k2, hidden, hidden)
    w3, b3 = linear(k3, hidden, out_dim)
    return dict(w1=w1, b1=b1, w2=w2, b2=b2, w3=w3, b3=b3)


def reference_forward(x, p):
    def softsign(v):
        return v / (1.0 + jnp.abs(v))
    h1 = softsign(x @ p["w1"] + p["b1"])
    h2 = softsign(h1 @ p["w2"] + p["b2"])
    return h2 @ p["w3"] + p["b3"]


if __name__ == "__main__":
    key = jax.random.PRNGKey(0)
    kx, kx2, kp = jax.random.split(key, 3)

    IN_DIM, OUT_DIM = 96, 12
    params = init_params(kp, in_dim=IN_DIM)
    packed = pack_params(params)

    # Small batch: single grid step, single-pass kernel body.
    B_small = 8
    x_small = jax.random.normal(kx, (B_small, IN_DIM), jnp.float32)
    out_small = jax.block_until_ready(big_mlp_forward(x_small, packed))
    ref_small = reference_forward(x_small, params)
    assert out_small.shape == (B_small, OUT_DIM), out_small.shape
    assert jnp.allclose(out_small, ref_small, atol=5e-2, rtol=5e-2), (
        "mismatch (small), max abs err = %g"
        % float(jnp.max(jnp.abs(out_small - ref_small))))

    # Larger batch: exercises the multi-step grid (megacore) and sub-chunked body.
    B_big = 1024
    x_big = jax.random.normal(kx2, (B_big, IN_DIM), jnp.float32)
    out_big = jax.block_until_ready(big_mlp_forward(x_big, packed))
    ref_big = reference_forward(x_big, params)
    assert out_big.shape == (B_big, OUT_DIM), out_big.shape
    assert jnp.allclose(out_big, ref_big, atol=5e-2, rtol=5e-2), (
        "mismatch (big), max abs err = %g"
        % float(jnp.max(jnp.abs(out_big - ref_big))))

    print("KERNEL_OK")
</pallas_src>

<mosaic_0001>
module attributes {stable_mosaic.version = 11 : i64} {
  func.func @mlp_kernel(%arg0: i32, %arg1: memref<16x96xf32, #tpu.memory_space<vmem>>, %arg2: memref<96x256xbf16, #tpu.memory_space<vmem>>, %arg3: memref<1x256xf32, #tpu.memory_space<vmem>>, %arg4: memref<256x256xbf16, #tpu.memory_space<vmem>>, %arg5: memref<1x256xf32, #tpu.memory_space<vmem>>, %arg6: memref<256x16xbf16, #tpu.memory_space<vmem>>, %arg7: memref<1x16xf32, #tpu.memory_space<vmem>>, %arg8: memref<16x16xf32, #tpu.memory_space<vmem>>) attributes {dimension_semantics = [#tpu.dimension_semantics<parallel>], iteration_bounds = array<i64: 1>, scalar_prefetch = 0 : i64, scratch_operands = 0 : i64, tpu.core_type = #tpu.core_type<tc>, window_params = [{transform_indices = @transform_0, window_bounds = array<i64: 16, 96>}, {pipeline_mode = #tpu.pipeline_mode<synchronous>, transform_indices = @transform_1, window_bounds = array<i64: 96, 256>}, {pipeline_mode = #tpu.pipeline_mode<synchronous>, transform_indices = @transform_2, window_bounds = array<i64: 1, 256>}, {pipeline_mode = #tpu.pipeline_mode<synchronous>, transform_indices = @transform_3, window_bounds = array<i64: 256, 256>}, {pipeline_mode = #tpu.pipeline_mode<synchronous>, transform_indices = @transform_4, window_bounds = array<i64: 1, 256>}, {pipeline_mode = #tpu.pipeline_mode<synchronous>, transform_indices = @transform_5, window_bounds = array<i64: 256, 16>}, {pipeline_mode = #tpu.pipeline_mode<synchronous>, transform_indices = @transform_6, window_bounds = array<i64: 1, 16>}, {transform_indices = @transform_7, window_bounds = array<i64: 16, 16>}]} {
    %c0 = arith.constant 0 : index
    %c0_0 = arith.constant 0 : index
    %0 = vector.load %arg2[%c0, %c0_0] : memref<96x256xbf16, #tpu.memory_space<vmem>>, vector<96x256xbf16>
    %c0_1 = arith.constant 0 : index
    %c0_2 = arith.constant 0 : index
    %1 = vector.load %arg3[%c0_1, %c0_2] : memref<1x256xf32, #tpu.memory_space<vmem>>, vector<1x256xf32>
    %c0_3 = arith.constant 0 : index
    %c0_4 = arith.constant 0 : index
    %2 = vector.load %arg4[%c0_3, %c0_4] : memref<256x256xbf16, #tpu.memory_space<vmem>>, vector<256x256xbf16>
    %c0_5 = arith.constant 0 : index
    %c0_6 = arith.constant 0 : index
    %3 = vector.load %arg5[%c0_5, %c0_6] : memref<1x256xf32, #tpu.memory_space<vmem>>, vector<1x256xf32>
    %c0_7 = arith.constant 0 : index
    %c0_8 = arith.constant 0 : index
    %4 = vector.load %arg6[%c0_7, %c0_8] : memref<256x16xbf16, #tpu.memory_space<vmem>>, vector<256x16xbf16>
    %c0_9 = arith.constant 0 : index
    %c0_10 = arith.constant 0 : index
    %5 = vector.load %arg7[%c0_9, %c0_10] : memref<1x16xf32, #tpu.memory_space<vmem>>, vector<1x16xf32>
    %c0_11 = arith.constant 0 : index
    %c0_12 = arith.constant 0 : index
    %6 = vector.load %arg1[%c0_11, %c0_12] : memref<16x96xf32, #tpu.memory_space<vmem>>, vector<16x96xf32>
    %7 = arith.truncf %6 : vector<16x96xf32> to vector<16x96xbf16>
    %cst = arith.constant dense<0.000000e+00> : vector<16x256xf32>
    %8 = tpu.matmul %7, %0, %cst {dimension_numbers = #tpu.dot_dimension_numbers<[1], [0], [0], [1], [0, 0, 1, 1], [], []>} : vector<16x96xbf16>, vector<96x256xbf16>, vector<16x256xf32> -> vector<16x256xf32>
    %9 = vector.broadcast %1 : vector<1x256xf32> to vector<16x256xf32>
    %10 = arith.addf %8, %9 : vector<16x256xf32>
    %11 = math.absf %10 : vector<16x256xf32>
    %cst_13 = arith.constant 1.000000e+00 : f32
    %12 = vector.broadcast %cst_13 : f32 to vector<16x256xf32>
    %13 = arith.addf %12, %11 : vector<16x256xf32>
    %14 = tpu.reciprocal %13 {approx = true} : vector<16x256xf32> -> vector<16x256xf32>
    %15 = arith.mulf %10, %14 : vector<16x256xf32>
    %16 = arith.truncf %15 : vector<16x256xf32> to vector<16x256xbf16>
    %cst_14 = arith.constant dense<0.000000e+00> : vector<16x256xf32>
    %17 = tpu.matmul %16, %2, %cst_14 {dimension_numbers = #tpu.dot_dimension_numbers<[1], [0], [0], [1], [0, 0, 1, 1], [], []>} : vector<16x256xbf16>, vector<256x256xbf16>, vector<16x256xf32> -> vector<16x256xf32>
    %18 = vector.broadcast %3 : vector<1x256xf32> to vector<16x256xf32>
    %19 = arith.addf %17, %18 : vector<16x256xf32>
    %20 = math.absf %19 : vector<16x256xf32>
    %cst_15 = arith.constant 1.000000e+00 : f32
    %21 = vector.broadcast %cst_15 : f32 to vector<16x256xf32>
    %22 = arith.addf %21, %20 : vector<16x256xf32>
    %23 = tpu.reciprocal %22 {approx = true} : vector<16x256xf32> -> vector<16x256xf32>
    %24 = arith.mulf %19, %23 : vector<16x256xf32>
    %25 = arith.truncf %24 : vector<16x256xf32> to vector<16x256xbf16>
    %cst_16 = arith.constant dense<0.000000e+00> : vector<16x16xf32>
    %26 = tpu.matmul %25, %4, %cst_16 {dimension_numbers = #tpu.dot_dimension_numbers<[1], [0], [0], [1], [0, 0, 1, 1], [], []>} : vector<16x256xbf16>, vector<256x16xbf16>, vector<16x16xf32> -> vector<16x16xf32>
    %27 = vector.broadcast %5 : vector<1x16xf32> to vector<16x16xf32>
    %28 = arith.addf %26, %27 : vector<16x16xf32>
    %c0_17 = arith.constant 0 : index
    %c0_18 = arith.constant 0 : index
    %29 = vector.load %arg8[%c0_17, %c0_18] : memref<16x16xf32, #tpu.memory_space<vmem>>, vector<16x16xf32>
    tpu.vector_store %arg8[%c0_17, %c0_18], %28 {strides = array<i32>} : memref<16x16xf32, #tpu.memory_space<vmem>>, vector<16x16xf32>,
    return
  }
  func.func @transform_0(%arg0: i32) -> (i32, i32) {
    %c0_i32 = arith.constant 0 : i32
    %c0_i32_0 = arith.constant 0 : i32
    return %arg0, %c0_i32 : i32, i32
  }
  func.func @transform_1(%arg0: i32) -> (i32, i32) {
    %c0_i32 = arith.constant 0 : i32
    %c0_i32_0 = arith.constant 0 : i32
    %c0_i32_1 = arith.constant 0 : i32
    return %c0_i32, %c0_i32_0 : i32, i32
  }
  func.func @transform_2(%arg0: i32) -> (i32, i32) {
    %c0_i32 = arith.constant 0 : i32
    %c0_i32_0 = arith.constant 0 : i32
    %c0_i32_1 = arith.constant 0 : i32
    return %c0_i32, %c0_i32_0 : i32, i32
  }
  func.func @transform_3(%arg0: i32) -> (i32, i32) {
    %c0_i32 = arith.constant 0 : i32
    %c0_i32_0 = arith.constant 0 : i32
    %c0_i32_1 = arith.constant 0 : i32
    return %c0_i32, %c0_i32_0 : i32, i32
  }
  func.func @transform_4(%arg0: i32) -> (i32, i32) {
    %c0_i32 = arith.constant 0 : i32
    %c0_i32_0 = arith.constant 0 : i32
    %c0_i32_1 = arith.constant 0 : i32
    return %c0_i32, %c0_i32_0 : i32, i32
  }
  func.func @transform_5(%arg0: i32) -> (i32, i32) {
    %c0_i32 = arith.constant 0 : i32
    %c0_i32_0 = arith.constant 0 : i32
    %c0_i32_1 = arith.constant 0 : i32
    return %c0_i32, %c0_i32_0 : i32, i32
  }
  func.func @transform_6(%arg0: i32) -> (i32, i32) {
    %c0_i32 = arith.constant 0 : i32
    %c0_i32_0 = arith.constant 0 : i32
    %c0_i32_1 = arith.constant 0 : i32
    return %c0_i32, %c0_i32_0 : i32, i32
  }
  func.func @transform_7(%arg0: i32) -> (i32, i32) {
    %c0_i32 = arith.constant 0 : i32
    %c0_i32_0 = arith.constant 0 : i32
    return %arg0, %c0_i32 : i32, i32
  }
}

</mosaic_0001>

<bundles_post_ra>
// kernel: _forward_padded.1
= control target key start
LH: loop header
LB: loop body
LE: loop exit
PB: predicated region body
PF: predicated region fallthrough
CT: control target
= control target key end

     0   :  { %12 = vsyncpa [#allocation3], 0  ;;  %s1068_s0 = inlined_call_operand.vmem [shape: f32[16,96], index: 0, kind: input, shape index: {}]   ;;  %s1069_s1 = inlined_call_operand.vmem [shape: bf16[96,256], index: 1, kind: input, shape index: {}]   ;;  %s1070_s2 = inlined_call_operand.vmem [shape: f32[1,256], index: 2, kind: input, shape index: {}]   ;;  %s1071_s3 = inlined_call_operand.hbm [shape: bf16[256,256], index: 3, kind: input, shape index: {}]   ;;  %s1072_s4 = inlined_call_operand.vmem [shape: f32[1,256], index: 4, kind: input, shape index: {}]   ;;  %s1073_s5 = inlined_call_operand.vmem [shape: bf16[256,16], index: 5, kind: input, shape index: {}]   ;;  %s1074_s6 = inlined_call_operand.vmem [shape: f32[1,16], index: 6, kind: input, shape index: {}]   ;;  %s1075_s7 = inlined_call_operand.hbm [shape: f32[16,16], index: 7, kind: output, shape index: {}]  }
   0x1   :  { %13 = vsyncpa [#allocation4], 0  ;;  %s890_s24 = smov [#allocation2]   ;;  %s842_s28 = scalar_lea.hbm %s1071_s3, 4096 }
   0x2   :  { %s25_s25 = sshll.u32 %s890_s24, 4  ;;  %p843_p0 = scmp.ne.s32.totalorder %s1071_s3, %s842_s28  ;;  %s26_s25 = int_to_ptr.vmem [resolvable:$true] %s25_s25 }
   0x3   :  { %p846_p1 = scmp.lt.u32.totalorder %s842_s28, %s1071_s3 }
   0x5   :  { %p848_p2 = pnand %p846_p1, %p843_p0 }
   0x7   :  { %851 = shalt.err (!%p848_p2)
}
   0x8   :  { %s852_s10 = scalar_lea.vmem %s26_s25, 4096  ;;  %p857_p4 = scmp.lt.s32.totalorder %s26_s25, %s26_s25 }
   0x9   :  { %p853_p3 = scmp.ne.s32.totalorder %s26_s25, %s852_s10  ;;  %p858_p5 = scmp.lt.s32.totalorder %s852_s10, %s852_s10 }
   0xb   :  { %p859_p6 = por %p858_p5, %p857_p4 }
   0xd   :  { %p860_p7 = pnand %p859_p6, %p853_p3 }
   0xf   :  { %863 = shalt.err (!%p860_p7)
}
  0x10   :  { %s891_s11 = smov 128   ;;  %s892_s12 = smov 8  }
  0x11   :  { %31 = dma.hbm_to_vmem [thread:$0]  %s1071_s3, 4096, %s26_s25, [#allocation3], %s891_s11, %s891_s11, %s892_s12  }
  0x12   :  { %886 = dma.done.wait [#allocation3], 4096  }
  0x13   :  { %887 = vsyncadd [#allocation3], 4294963200  ;;  %v893_v0 = vmov 0   ;;  %v744_v1 = vld [vmem:[%s1069_s1 + $0x4] ss:$8 sps:$4 sm:$0xff]   ;;  %vm195_vm0 = vcmask 785408   ;;  %v125_v52 = vlaneseq }
  0x14   :  { %231 = vmatprep.mubr.bf16.mxu0 %v893_v0  ;;  %v746_v2 = vld [vmem:[%s1069_s1] ss:$8 sps:$4 sm:$0xff]   ;;  %199 = vmatprep.subr.bf16.mxu0 %v744_v1  ;;  %v747_v3 = vld [vmem:[%s1069_s1 + $0x14] ss:$8 sps:$4 sm:$0xff]   ;;  %v749_v4 = vld [vmem:[%s1069_s1 + $0x10] ss:$8 sps:$4 sm:$0xff]  }
  0x15   :  { %200 = vmatpush1.bf16.msra.mxu0 %v746_v2  ;;  %v750_v5 = vld [vmem:[%s1069_s1 + $0x24] ss:$8 sps:$4 sm:$0xff]   ;;  %v752_v6 = vld [vmem:[%s1069_s1 + $0x20] ss:$8 sps:$4 sm:$0xff]   ;;  %v753_v7 = vld [vmem:[%s1069_s1 + $0x34] ss:$8 sps:$4 sm:$0xff]  }
  0x16   :  { %201 = vmatprep.subr.bf16.mxu0 %v747_v3  ;;  %v762_v8 = vld [vmem:[#allocation2 + $0x4] ss:$8 sps:$4 sm:$0xff]   ;;  %v764_v9 = vld [vmem:[#allocation2] ss:$8 sps:$4 sm:$0xff]   ;;  %v765_v10 = vld [vmem:[#allocation2 + $0x14] ss:$8 sps:$4 sm:$0xff]  }
  0x17   :  { %v755_v11 = vld [vmem:[%s1069_s1 + $0x30] ss:$8 sps:$4 sm:$0xff]   ;;  %431 = vmatprep.subr.bf16.mxu1 %v762_v8  ;;  %v756_v12 = vld [vmem:[%s1069_s1 + $0x44] ss:$8 sps:$4 sm:$0xff]   ;;  %v758_v15 = vld [vmem:[%s1069_s1 + $0x40] ss:$8 sps:$4 sm:$0xff]  }
  0x18   :  { %432 = vmatpush1.bf16.msra.mxu1 %v764_v9  ;;  %v767_v13 = vld [vmem:[#allocation2 + $0x10] ss:$8 sps:$4 sm:$0xff]   ;;  %v768_v14 = vld [vmem:[#allocation2 + $0x24] ss:$8 sps:$4 sm:$0xff]   ;;  %v759_v16 = vld [vmem:[%s1069_s1 + $0x54] ss:$8 sps:$4 sm:$0xff]  }
  0x19   :  { %202 = vmatpush1.bf16.msra.mxu0 %v749_v4  ;;  %433 = vmatprep.subr.bf16.mxu1 %v765_v10  ;;  %v770_v17 = vld [vmem:[#allocation2 + $0x20] ss:$8 sps:$4 sm:$0xff]   ;;  %v761_v18 = vld [vmem:[%s1069_s1 + $0x50] ss:$8 sps:$4 sm:$0xff]   ;;  %v771_v19 = vld [vmem:[#allocation2 + $0x34] ss:$8 sps:$4 sm:$0xff]  }
  0x1a   :  { %203 = vmatprep.subr.bf16.mxu0 %v750_v5  ;;  %v121_v20 = vld [vmem:[%s1068_s0] sm:$0xff]  ;;  %v122_v21 = vld [vmem:[%s1068_s0 + $0x8] sm:$0xff]  ;;  %v773_v22 = vld [vmem:[#allocation2 + $0x30] ss:$8 sps:$4 sm:$0xff]   ;;  %v1004_v53 = vshrl.u32 %v125_v52, 7  ;;  %vm635_vm1 = vcmask 130048  }
  0x1b   :  { %v774_v23 = vld [vmem:[#allocation2 + $0x44] ss:$8 sps:$4 sm:$0xff]   ;;  %v123_v24 = vpack.c.bf16 %v122_v21, %v121_v20  ;;  %v776_v25 = vld [vmem:[#allocation2 + $0x40] ss:$8 sps:$4 sm:$0xff]   ;;  %v777_v26 = vld [vmem:[#allocation2 + $0x54] ss:$8 sps:$4 sm:$0xff]  }
  0x1c   :  { %434 = vmatpush1.bf16.msra.mxu1 %v767_v13  ;;  %v779_v27 = vld [vmem:[#allocation2 + $0x50] ss:$8 sps:$4 sm:$0xff]   ;;  %v780_v28 = vld [vmem:[#allocation2 + $0x64] ss:$8 sps:$4 sm:$0xff]   ;;  %v782_v29 = vld [vmem:[#allocation2 + $0x60] ss:$8 sps:$4 sm:$0xff]  }
  0x1d   :  { %204 = vmatpush1.bf16.msra.mxu0 %v752_v6  ;;  %435 = vmatprep.subr.bf16.mxu1 %v768_v14  ;;  %v783_v30 = vld [vmem:[#allocation2 + $0x74] ss:$8 sps:$4 sm:$0xff]   ;;  %v785_v31 = vld [vmem:[#allocation2 + $0x70] ss:$8 sps:$4 sm:$0xff]   ;;  %v786_v32 = vld [vmem:[#allocation2 + $0x84] ss:$8 sps:$4 sm:$0xff]  }
  0x1e   :  { %205 = vmatprep.subr.bf16.mxu0 %v753_v7  ;;  %v788_v33 = vld [vmem:[#allocation2 + $0x80] ss:$8 sps:$4 sm:$0xff]   ;;  %v789_v34 = vld [vmem:[#allocation2 + $0x94] ss:$8 sps:$4 sm:$0xff]   ;;  %v791_v35 = vld [vmem:[#allocation2 + $0x90] ss:$8 sps:$4 sm:$0xff]  }
  0x1f   :  { %v792_v36 = vld [vmem:[#allocation2 + $0xa4] ss:$8 sps:$4 sm:$0xff]   ;;  %v794_v37 = vld [vmem:[#allocation2 + $0xa0] ss:$8 sps:$4 sm:$0xff]   ;;  %v795_v38 = vld [vmem:[#allocation2 + $0xb4] ss:$8 sps:$4 sm:$0xff]  }
  0x20   :  { %436 = vmatpush1.bf16.msra.mxu1 %v770_v17  ;;  %v797_v39 = vld [vmem:[#allocation2 + $0xb0] ss:$8 sps:$4 sm:$0xff]   ;;  %v798_v40 = vld [vmem:[#allocation2 + $0xc4] ss:$8 sps:$4 sm:$0xff]   ;;  %v800_v41 = vld [vmem:[#allocation2 + $0xc0] ss:$8 sps:$4 sm:$0xff]  }
  0x21   :  { %206 = vmatpush1.bf16.msra.mxu0 %v755_v11  ;;  %437 = vmatprep.subr.bf16.mxu1 %v771_v19  ;;  %v801_v42 = vld [vmem:[#allocation2 + $0xd4] ss:$8 sps:$4 sm:$0xff]   ;;  %v803_v43 = vld [vmem:[#allocation2 + $0xd0] ss:$8 sps:$4 sm:$0xff]   ;;  %v804_v44 = vld [vmem:[#allocation2 + $0xe4] ss:$8 sps:$4 sm:$0xff]  }
  0x22   :  { %207 = vmatprep.subr.bf16.mxu0 %v756_v12  ;;  %v806_v45 = vld [vmem:[#allocation2 + $0xe0] ss:$8 sps:$4 sm:$0xff]   ;;  %v807_v46 = vld [vmem:[#allocation2 + $0xf4] ss:$8 sps:$4 sm:$0xff]   ;;  %v809_v47 = vld [vmem:[#allocation2 + $0xf0] ss:$8 sps:$4 sm:$0xff]  }
  0x23   :  { %v810_v48 = vld [vmem:[%s1073_s5 + $0x40] sm:$0xff]   ;;  %v812_v50 = vld [vmem:[%s1073_s5 + $0x48] sm:$0xff]   ;;  %v127_v54 = vsub.s32 0, %v1004_v53  ;;  %v131_v56 = vsub.s32 1, %v1004_v53  ;;  %v814_v21 = vld [vmem:[%s1073_s5 + $0x50] sm:$0xff]   ;;  %s894_s28 = smov [#allocation5]  }
  0x24   :  { %438 = vmatpush1.bf16.msra.mxu1 %v773_v22  ;;  %v811_v49 = vld [vmem:[%s1073_s5] sm:$0xff]   ;;  %v813_v51 = vld [vmem:[%s1073_s5 + $0x8] sm:$0xff]   ;;  %v815_v22 = vld [vmem:[%s1073_s5 + $0x10] sm:$0xff]   ;;  %s643_s29 = sshll.u32 %s894_s28, 4  ;;  %s644_s29 = int_to_ptr.vmem [resolvable:$true] %s643_s29 }
  0x25   :  { %208 = vmatpush1.bf16.msra.mxu0 %v758_v15  ;;  %439 = vmatprep.subr.bf16.mxu1 %v774_v23  ;;  %v54_v55 = vld [vmem:[%s1070_s2] sm:$0x3]  ;;  %v816_v23 = vld [vmem:[%s1073_s5 + $0x58] sm:$0xff]   ;;  %s864_s30 = scalar_lea.vmem %s644_s29, 256  ;;  %p869_p9 = scmp.lt.s32.totalorder %s644_s29, %s644_s29 }
  0x26   :  { %209 = vmatprep.subr.bf16.mxu0 %v759_v16  ;;  %v128_v57 = vrot.slane %v54_v55, %v127_v54  ;;  %v132_v58 = vrot.slane %v54_v55, %v131_v56  ;;  %p865_p8 = scmp.ne.s32.totalorder %s644_s29, %s864_s30  ;;  %p870_p10 = scmp.lt.s32.totalorder %s864_s30, %s864_s30 }
  0x28   :  { %440 = vmatpush1.bf16.msra.mxu1 %v776_v25  ;;  %v818_v25 = vld [vmem:[%s1073_s5 + $0x60] sm:$0xff]   ;;  %p871_p11 = por %p870_p10, %p869_p9 }
  0x29   :  { %210 = vmatpush1.bf16.msra.mxu0 %v761_v18  ;;  %441 = vmatprep.subr.bf16.mxu1 %v777_v26  ;;  %v819_v26 = vld [vmem:[%s1073_s5 + $0x20] sm:$0xff]  }
  0x2a   :  { %717 = vmatprep.subr.bf16.mxu0 %v810_v48  ;;  %p872_p12 = pnand %p871_p11, %p865_p8 }
  0x2c   :  { %667 = vmatmul.mubr.msk.bf16.vlgmr.msra.gmra.mrb[0].mxu0 %vm195_vm0, %v123_v24  ;;  %442 = vmatpush1.bf16.msra.mxu1 %v779_v27  ;;  %v817_v24 = vld [vmem:[%s1073_s5 + $0x18] sm:$0xff]   ;;  %v820_v27 = vld [vmem:[%s1073_s5 + $0x68] sm:$0xff]  }
  0x2d   :  { %443 = vmatprep.subr.bf16.mxu1 %v780_v28  ;;  %718 = vmatpush3.bf16.msra.mxu0 %v811_v49  ;;  %v821_v28 = vld [vmem:[%s1073_s5 + $0x28] sm:$0xff]  }
  0x2e   :  { %719 = vmatprep.subr.bf16.mxu0 %v812_v50 }
  0x30   :  { %444 = vmatpush1.bf16.msra.mxu1 %v782_v29  ;;  %v822_v29 = vld [vmem:[%s1073_s5 + $0x70] sm:$0xff]  }
  0x31   :  { %445 = vmatprep.subr.bf16.mxu1 %v783_v30  ;;  %720 = vmatpush3.bf16.msra.mxu0 %v813_v51  ;;  %v823_v30 = vld [vmem:[%s1073_s5 + $0x30] sm:$0xff]  }
  0x32   :  { %721 = vmatprep.subr.bf16.mxu0 %v814_v21 }
  0x34   :  { %446 = vmatpush1.bf16.msra.mxu1 %v785_v31  ;;  %v824_v31 = vld [vmem:[%s1073_s5 + $0x78] sm:$0xff]  }
  0x35   :  { %447 = vmatprep.subr.bf16.mxu1 %v786_v32  ;;  %722 = vmatpush3.bf16.msra.mxu0 %v815_v22  ;;  %v825_v32 = vld [vmem:[%s1073_s5 + $0x38] sm:$0xff]  }
  0x36   :  { %723 = vmatprep.subr.bf16.mxu0 %v816_v23 }
  0x38   :  { %448 = vmatpush1.bf16.msra.mxu1 %v788_v33  ;;  %v87_v33 = vld [vmem:[%s1072_s4] sm:$0x3] }
  0x39   :  { %449 = vmatprep.subr.bf16.mxu1 %v789_v34  ;;  %724 = vmatpush3.bf16.msra.mxu0 %v817_v24  ;;  %v264_v34 = vrot.slane %v87_v33, %v127_v54 }
  0x3a   :  { %725 = vmatprep.subr.bf16.mxu0 %v818_v25 }
  0x3c   :  { %450 = vmatpush1.bf16.msra.mxu1 %v791_v35  ;;  %v268_v35 = vrot.slane %v87_v33, %v131_v56 }
  0x3d   :  { %451 = vmatprep.subr.bf16.mxu1 %v792_v36  ;;  %726 = vmatpush3.bf16.msra.mxu0 %v819_v26 }
  0x3e   :  { %727 = vmatprep.subr.bf16.mxu0 %v820_v27 }
  0x40   :  { %452 = vmatpush1.bf16.msra.mxu1 %v794_v37 }
  0x41   :  { %453 = vmatprep.subr.bf16.mxu1 %v795_v38  ;;  %728 = vmatpush3.bf16.msra.mxu0 %v821_v28 }
  0x42   :  { %729 = vmatprep.subr.bf16.mxu0 %v822_v29 }
  0x44   :  { %454 = vmatpush1.bf16.msra.mxu1 %v797_v39 }
  0x45   :  { %455 = vmatprep.subr.bf16.mxu1 %v798_v40  ;;  %730 = vmatpush3.bf16.msra.mxu0 %v823_v30 }
  0x46   :  { %731 = vmatprep.subr.bf16.mxu0 %v824_v31 }
  0x48   :  { %456 = vmatpush1.bf16.msra.mxu1 %v800_v41 }
  0x49   :  { %457 = vmatprep.subr.bf16.mxu1 %v801_v42  ;;  %732 = vmatpush3.bf16.msra.mxu0 %v825_v32 }
  0x4c   :  { %458 = vmatpush1.bf16.msra.mxu1 %v803_v43 }
  0x4d   :  { %459 = vmatprep.subr.bf16.mxu1 %v804_v44 }
  0x50   :  { %460 = vmatpush1.bf16.msra.mxu1 %v806_v45 }
  0x51   :  { %461 = vmatprep.subr.bf16.mxu1 %v807_v46 }
  0x54   :  { %462 = vmatpush1.bf16.msra.mxu1 %v809_v47 }
  0xff   :  { %v233_v59 = vpop.f32.mrb[0].mxu0 }
 0x100   :  { %v234_v60 = vadd.f32 %v233_v59, %v128_v57  ;;  %v235_v61 = vpop.f32.mrb[1].mxu0 }
 0x101   :  { %v236_v62 = vadd.f32 %v235_v61, %v132_v58  ;;  %v237_v63 = vpop.f32.mrb[2].mxu0 }
 0x102   :  { %v242_v0 = vand.u32 2147483647, %v234_v60  ;;  %v238_v1 = vadd.f32 %v237_v63, %v128_v57  ;;  %v239_v2 = vpop.f32.mrb[3].mxu0  ;;  %v700_v63 = vld [vmem:[%s1074_s6] ss:$0 sm:$0xff] }
 0x103   :  { %v243_v3 = vand.u32 2147483647, %v236_v62  ;;  %v240_v4 = vadd.f32 %v239_v2, %v132_v58 }
 0x104   :  { %v246_v5 = vadd.f32 1.0, %v242_v0  ;;  %v244_v6 = vand.u32 2147483647, %v238_v1 }
 0x105   :  { %v247_v7 = vadd.f32 1.0, %v243_v3  ;;  %v245_v8 = vand.u32 2147483647, %v240_v4 }
 0x106   :  { %826 = vrcp.f32 %v246_v5  ;;  %v248_v9 = vadd.f32 1.0, %v244_v6 }
 0x107   :  { %828 = vrcp.f32 %v247_v7  ;;  %v249_v10 = vadd.f32 1.0, %v245_v8 }
 0x108   :  { %830 = vrcp.f32 %v248_v9 }
 0x109   :  { %832 = vrcp.f32 %v249_v10 }
 0x110   :  { %v827_v11 = vpop.eup %826 }
 0x111   :  { %v829_v12 = vpop.eup %828  ;;  %v254_v15 = vmul.f32 %v827_v11, %v234_v60 }
 0x112   :  { %v831_v13 = vpop.eup %830  ;;  %v255_v17 = vmul.f32 %v829_v12, %v236_v62 }
 0x113   :  { %v833_v14 = vpop.eup %832  ;;  %v256_v16 = vmul.f32 %v831_v13, %v238_v1 }
 0x114   :  { %v257_v18 = vmul.f32 %v833_v14, %v240_v4 }
 0x115   :  { %v258_v19 = vpack.c.bf16 %v256_v16, %v254_v15 }
 0x116   :  { %v259_v20 = vpack.c.bf16 %v257_v18, %v255_v17 }
 0x118   :  { %463 = vmatprep.mubr.bf16.mxu1 %v259_v20 }
 0x119   :  { %464 = vmatmul.mubr.bf16.vlgmr.msra.gmra.mrb[0].mxu1 %v258_v19 }
 0x1ec   :  { %v465_v36 = vpop.f32.mrb[0].mxu1 }
 0x1ed   :  { %v466_v37 = vadd.f32 %v465_v36, %v264_v34  ;;  %v467_v38 = vpop.f32.mrb[1].mxu1 }
 0x1ee   :  { %v468_v39 = vadd.f32 %v467_v38, %v268_v35  ;;  %v469_v40 = vpop.f32.mrb[2].mxu1 }
 0x1ef   :  { %v474_v41 = vand.u32 2147483647, %v466_v37  ;;  %v470_v42 = vadd.f32 %v469_v40, %v264_v34  ;;  %v471_v43 = vpop.f32.mrb[3].mxu1 }
 0x1f0   :  { %v475_v44 = vand.u32 2147483647, %v468_v39  ;;  %v472_v45 = vadd.f32 %v471_v43, %v268_v35 }
 0x1f1   :  { %v478_v46 = vadd.f32 1.0, %v474_v41  ;;  %v476_v47 = vand.u32 2147483647, %v470_v42 }
 0x1f2   :  { %v479_v48 = vadd.f32 1.0, %v475_v44  ;;  %v477_v49 = vand.u32 2147483647, %v472_v45 }
 0x1f3   :  { %834 = vrcp.f32 %v478_v46  ;;  %v480_v50 = vadd.f32 1.0, %v476_v47 }
 0x1f4   :  { %836 = vrcp.f32 %v479_v48  ;;  %v481_v51 = vadd.f32 1.0, %v477_v49 }
 0x1f5   :  { %838 = vrcp.f32 %v480_v50 }
 0x1f6   :  { %840 = vrcp.f32 %v481_v51 }
 0x1fd   :  { %v835_v52 = vpop.eup %834 }
 0x1fe   :  { %v837_v53 = vpop.eup %836  ;;  %v486_v56 = vmul.f32 %v835_v52, %v466_v37 }
 0x1ff   :  { %v839_v54 = vpop.eup %838  ;;  %v487_v58 = vmul.f32 %v837_v53, %v468_v39 }
 0x200   :  { %v841_v55 = vpop.eup %840  ;;  %v488_v57 = vmul.f32 %v839_v54, %v470_v42 }
 0x201   :  { %v489_v59 = vmul.f32 %v841_v55, %v472_v45 }
 0x202   :  { %v490_v60 = vpack.c.bf16 %v488_v57, %v486_v56 }
 0x203   :  { %v491_v61 = vpack.c.bf16 %v489_v59, %v487_v58 }
 0x205   :  { %626 = vmatprep.mubr.bf16.mxu0 %v491_v61 }
 0x206   :  { %627 = vmatmul.mubr.bf16.vlgmr.msra.gmra.mrb[4].mxu0 %v490_v60 }
 0x2d9   :  { %v733_v62 = vpop.f32.mrb[4].mxu0 }
 0x2da   :  { %v734_v0 = vpop.f32.mrb[5].mxu0 }
 0x2db   :  { %v735_v1 = vadd.f32 %v734_v0, %v733_v62  ;;  %v736_v2 = vpop.f32.mrb[6].mxu0 }
 0x2dc   :  { %v737_v3 = vpop.f32.mrb[7].mxu0 }
 0x2dd   :  { %v629_v4 = vadd.f32 %v735_v1, %v700_v63  ;;  %v738_v5 = vadd.f32 %v737_v3, %v736_v2 }
 0x2df   :  { %v632_v6 = vadd.f32 %v738_v5, %v700_v63  ;;  %636 = vst.msk [vmem:[#allocation5] sm:$0xff] %vm635_vm1, %v629_v4 }
 0x2e1   :  { %637 = vst.msk [vmem:[#allocation5 + $0x8] sm:$0xff] %vm635_vm1, %v632_v6 }
 0x2e2   :  { %875 = shalt.err (!%p872_p12)
}
 0x2e3   :  { %s876_s9 = scalar_lea.hbm %s1075_s7, 256 }
 0x2e4   :  { %p877_p13 = scmp.ne.s32.totalorder %s1075_s7, %s876_s9  ;;  %p880_p0 = scmp.lt.u32.totalorder %s876_s9, %s1075_s7 }
 0x2e6   :  { %p882_p1 = pnand %p880_p0, %p877_p13 }
 0x2e8   :  { %885 = shalt.err (!%p882_p1)
}
 0x2e9   :  { %649 = dma.vmem_to_hbm [thread:$0]  %s644_s29, 256, %s1075_s7, [#allocation4], %s891_s11, %s891_s11, %s892_s12  }
 0x2ea   :  { %888 = dma.done.wait [#allocation4], 256  }
 0x2eb   :  { %889 = vsyncadd [#allocation4], 4294967040 }
 0x2ec   :  { %653 = vsyncpa [#allocation3], 1 }
 0x2ed   :  { %654 = vsyncpa [#allocation4], 1 }

</bundles_post_ra>
